<compile_context>
chip_gen: v5e
topology: v5e:2x2
jax: 0.10.0
libtpu: 0.0.40
codegen_flags: <defaults>
</compile_context>

<pallas_src>
import jax
import jax.numpy as jnp
from jax.experimental import pallas as pl
from jax.experimental.pallas import tpu as pltpu

BATCHSIZE = 3
CLASSNUM = 6
DIM1 = CLASSNUM
SEQLEN = 5  # unused by the forward pass (kept for parity with the module signature)

# Deterministic parameters copied from the module's __init__ (nn.Linear layout:
# weight is (out_features, in_features) = (classnum, dim1)).
FC_WEIGHT = jnp.array(
    [[0.149, -0.0909, 0.0056, 0.2489, 0.2706, 0.3366],
     [0.2262, 0.3199, -0.1338, 0.1753, -0.3995, -0.2002],
     [0.3979, 0.0298, 0.3689, -0.232, -0.0523, -0.0655],
     [-0.347, -0.2024, 0.0705, 0.1303, -0.0123, -0.224],
     [-0.032, -0.0361, 0.0675, 0.3214, 0.343, -0.3797],
     [0.2855, -0.2217, 0.1066, 0.0015, -0.1856, -0.1491]],
    dtype=jnp.float32,
)  # (classnum, dim1)

FC_BIAS = jnp.array(
    [0.317, 0.2004, -0.3995, -0.2146, 0.2227, 0.3299], dtype=jnp.float32
)  # (classnum,)

# Hoisted once at module init: pre-transposed weight (dim1, classnum) so the kernel
# does a plain jnp.dot (no in-kernel transpose), and bias as a broadcastable row.
FC_WEIGHT_T = FC_WEIGHT.T                    # (dim1, classnum)
FC_BIAS_ROW = FC_BIAS.reshape(1, CLASSNUM)   # (1, classnum)


def linear_kernel(x_ref, wt_ref, b_ref, o_ref):
    # x: (B, K), wt: (K, N) — already transposed in the wrapper, b: (1, N)
    y = jnp.dot(x_ref[...], wt_ref[...], preferred_element_type=jnp.float32)
    o_ref[...] = (y + b_ref[...]).astype(o_ref.dtype)


@jax.jit
def generator_forward(x, weight_t, bias_row):
    """x: (batch, dim1) f32, weight_t: (dim1, classnum) pre-transposed,
    bias_row: (1, classnum) -> (batch, classnum) f32."""
    batch, dim1 = x.shape
    classnum = weight_t.shape[1]

    # Accurate (unpadded) advisory cost for XLA's scheduler.
    cost = pl.CostEstimate(
        flops=2 * batch * dim1 * classnum,
        transcendentals=0,
        bytes_accessed=4 * (batch * dim1 + dim1 * classnum
                            + classnum + batch * classnum),
    )

    vmem_spec = pl.BlockSpec(memory_space=pltpu.MemorySpace.VMEM)

    return pl.pallas_call(
        linear_kernel,
        out_shape=jax.ShapeDtypeStruct((batch, classnum), jnp.float32),
        in_specs=[vmem_spec, vmem_spec, vmem_spec],
        out_specs=vmem_spec,
        cost_estimate=cost,
    )(x, weight_t, bias_row)


if __name__ == "__main__":
    # The module's deterministic example input (built in-script).
    x = jnp.array(
        [[0.1334, 0.4332, 0.9542, 0.0585, 0.7362, 0.9372],
         [0.1247, 0.2, 0.6954, 0.4101, 0.0087, 0.5814],
         [0.5126, 0.5473, 0.4716, 0.952, 0.73, 0.0541]],
        dtype=jnp.float32,
    )
    # PRNGKey retained only for determinism-contract parity (no random inputs needed).
    _ = jax.random.PRNGKey(0)

    out = generator_forward(x, FC_WEIGHT_T, FC_BIAS_ROW)
    out = jax.block_until_ready(out)

    # Reference check in plain JAX.
    ref = x @ FC_WEIGHT.T + FC_BIAS
    assert out.shape == (BATCHSIZE, CLASSNUM)
    assert jnp.allclose(out, ref, atol=1e-5), (out, ref)

    print("KERNEL_OK")
</pallas_src>

<mosaic_0001>
module attributes {stable_mosaic.version = 11 : i64} {
  func.func @linear_kernel(%arg0: memref<3x6xf32, #tpu.memory_space<vmem>>, %arg1: memref<6x6xf32, #tpu.memory_space<vmem>>, %arg2: memref<1x6xf32, #tpu.memory_space<vmem>>, %arg3: memref<3x6xf32, #tpu.memory_space<vmem>>) attributes {dimension_semantics = [], scalar_prefetch = 0 : i64, scratch_operands = 0 : i64, tpu.core_type = #tpu.core_type<tc>} {
    %c0 = arith.constant 0 : index
    %c0_0 = arith.constant 0 : index
    %0 = vector.load %arg0[%c0, %c0_0] : memref<3x6xf32, #tpu.memory_space<vmem>>, vector<3x6xf32>
    %c0_1 = arith.constant 0 : index
    %c0_2 = arith.constant 0 : index
    %1 = vector.load %arg1[%c0_1, %c0_2] : memref<6x6xf32, #tpu.memory_space<vmem>>, vector<6x6xf32>
    %cst = arith.constant dense<0.000000e+00> : vector<3x6xf32>
    %2 = tpu.matmul %0, %1, %cst {dimension_numbers = #tpu.dot_dimension_numbers<[1], [0], [0], [1], [0, 0, 1, 1], [], []>} : vector<3x6xf32>, vector<6x6xf32>, vector<3x6xf32> -> vector<3x6xf32>
    %c0_3 = arith.constant 0 : index
    %c0_4 = arith.constant 0 : index
    %3 = vector.load %arg2[%c0_3, %c0_4] : memref<1x6xf32, #tpu.memory_space<vmem>>, vector<1x6xf32>
    %4 = vector.broadcast %3 : vector<1x6xf32> to vector<3x6xf32>
    %5 = arith.addf %2, %4 : vector<3x6xf32>
    %c0_5 = arith.constant 0 : index
    %c0_6 = arith.constant 0 : index
    %6 = vector.load %arg3[%c0_5, %c0_6] : memref<3x6xf32, #tpu.memory_space<vmem>>, vector<3x6xf32>
    tpu.vector_store %arg3[%c0_5, %c0_6], %5 {strides = array<i32>} : memref<3x6xf32, #tpu.memory_space<vmem>>, vector<3x6xf32>,
    return
  }
}

</mosaic_0001>

<bundles_post_ra>
// kernel: generator_forward.1
= control target key start
LH: loop header
LB: loop body
LE: loop exit
PB: predicated region body
PF: predicated region fallthrough
CT: control target
= control target key end

     0   :  { %8 = vsyncpa [#allocation3], 0  ;;  %s216_s0 = inlined_call_operand.hbm [shape: f32[3,6], index: 0, kind: input, shape index: {}]   ;;  %s217_s1 = inlined_call_operand.hbm [shape: f32[6,6], index: 1, kind: input, shape index: {}]   ;;  %s218_s2 = inlined_call_operand.vmem [shape: f32[1,6], index: 2, kind: input, shape index: {}]   ;;  %s219_s3 = inlined_call_operand.hbm [shape: f32[3,6], index: 3, kind: output, shape index: {}]  }
   0x1   :  { %9 = vsyncpa [#allocation6], 0 }
   0x2   :  { %10 = vsyncpa [#allocation4], 0  ;;  %s16_s14 = sshll.u32 %s216_s0, 4  ;;  %s181_s15 = smov [#allocation2]   ;;  %s17_s14 = int_to_ptr.hbm [resolvable:$true] %s16_s14 }
   0x3   :  { %s18_s16 = sshll.u32 %s181_s15, 4  ;;  %s27_s19 = sshll.u32 %s217_s1, 4  ;;  %s19_s16 = int_to_ptr.vmem [resolvable:$true] %s18_s16  ;;  %s28_s19 = int_to_ptr.hbm [resolvable:$true] %s27_s19 }
   0x4   :  { %21 = dma.hbm_to_vmem [thread:$0]  %s17_s14, 64, %s19_s16, [#allocation3]  }
   0x5   :  { %s182_s20 = smov [#allocation5]  }
   0x6   :  { %s29_s21 = sshll.u32 %s182_s20, 4  ;;  %s30_s21 = int_to_ptr.vmem [resolvable:$true] %s29_s21 }
   0x7   :  { %32 = dma.hbm_to_vmem [thread:$0]  %s28_s19, 128, %s30_s21, [#allocation6]  }
   0x8   :  { %175 = dma.done.wait [#allocation3], 64  }
   0x9   :  { %176 = vsyncadd [#allocation3], 4294967232 }
   0xa   :  { %177 = dma.done.wait [#allocation6], 128  }
   0xb   :  { %178 = vsyncadd [#allocation6], 4294967168  ;;  %vm53_vm0 = vcmask 1045504   ;;  %vm49_vm1 = vcmask 48128   ;;  %v44_v0 = vld [vmem:[#allocation5] sm:$0x3f] }
   0xc   :  { %v43_v1 = vld [vmem:[#allocation2] sm:$0x7]  ;;  %97 = vmatpush.msk.msra.mxu0 %vm53_vm0, %v44_v0  ;;  %s183_s1 = smov [#allocation7]   ;;  %s86_s26 = sshll.u32 %s219_s3, 4  ;;  %vm77_vm2 = vcmask 43008   ;;  %s87_s26 = int_to_ptr.hbm [resolvable:$true] %s86_s26 }
   0xd   :  { %98 = vmatmul.msk.f32.vlgmr.msra.gmra.mxu0 %vm49_vm1, %v43_v1  ;;  %v102_v2 = vld [vmem:[%s218_s2] ss:$0 sm:$0xff]  ;;  %s84_s23 = sshll.u32 %s183_s1, 4  ;;  %s85_s23 = int_to_ptr.vmem [resolvable:$true] %s84_s23 }
  0x8a   :  { %v74_v3 = vpop.f32.mrf.mxu0 }
  0x8b   :  { %v75_v4 = vadd.f32 %v102_v2, %v74_v3 }
  0x8d   :  { %78 = vst.msk [vmem:[#allocation7] sm:$0x7] %vm77_vm2, %v75_v4 }
  0x8e   :  { %89 = dma.vmem_to_hbm [thread:$0]  %s85_s23, 64, %s87_s26, [#allocation4]  }
  0x8f   :  { %179 = dma.done.wait [#allocation4], 64  }
  0x90   :  { %180 = vsyncadd [#allocation4], 4294967232 }
  0x91   :  { %94 = vsyncpa [#allocation3], 1 }
  0x92   :  { %95 = vsyncpa [#allocation6], 1 }
  0x93   :  { %96 = vsyncpa [#allocation4], 1 }

</bundles_post_ra>
